<compile_context>
chip_gen: v6e
topology: v6e:2x2x1
jax: 0.10.0
libtpu: 0.0.40
codegen_flags: <defaults>
</compile_context>

<pallas_src>
import jax
import jax.numpy as jnp
from jax import lax
from jax.experimental import pallas as pl
from jax.experimental.pallas import tpu as pltpu


# ---------------------------------------------------------------------------
# Constants
# ---------------------------------------------------------------------------

_IN = 30            # fc1 input features
_D = 128            # hidden feature dims (120, 84) padded to one 128-lane tile
_TILE_CAP = 1024    # max batch rows per grid step (VMEM footprint ~3 MiB at cap)

_RELU_MAX = 6.0
_RELU_SCALE = _RELU_MAX / 255.0          # 8-bit unsigned uniform quant of [0, 6]
_RELU_INV_SCALE = 255.0 / _RELU_MAX      # precomputed: multiply, never divide


def _cdiv(a, b):
    return -(-a // b)


def _round_up(n, m):
    return ((n + m - 1) // m) * m


def _pad2(a, shape):
    return jnp.pad(a, [(0, t - s) for s, t in zip(a.shape, shape)])


# ---------------------------------------------------------------------------
# One-time parameter prep (outside the hot path)
# ---------------------------------------------------------------------------

def fake_quant_int8_weight(w):
    """Symmetric per-tensor int8 fake quantization (brevitas INT, bit_width=8)."""
    scale = jnp.max(jnp.abs(w)) / 127.0
    scale = jnp.maximum(scale, 1e-12)
    return jnp.clip(jnp.round(w / scale), -127.0, 127.0) * scale


def init_linear(key, fan_in, fan_out, bias=True):
    """PyTorch-style uniform(-1/sqrt(fan_in), 1/sqrt(fan_in)) init, deterministic."""
    kw, kb = jax.random.split(key)
    bound = 1.0 / jnp.sqrt(jnp.float32(fan_in))
    w = jax.random.uniform(kw, (fan_in, fan_out), jnp.float32, -bound, bound)
    b = (jax.random.uniform(kb, (1, fan_out), jnp.float32, -bound, bound)
         if bias else None)
    return w, b


def pack_params(w1q, b1, w2q, b2, w3q):
    """One-time layout prep: pad to (8,128)-aligned resident tiles (all f32).

    Call once at init; pass the result into quant_mlp_forward on every call.
    Zero padding is exact: padded rows/cols contribute nothing and relu6(0)==0.
    """
    w1_p = _pad2(w1q, (_D, _D))        # (30, 120)  -> (128, 128)
    b1_p = _pad2(b1, (1, _D))          # (1, 120)   -> (1, 128)
    w2_p = _pad2(w2q, (_D, _D))        # (120, 84)  -> (128, 128)
    b2_p = _pad2(b2, (1, _D))          # (1, 84)    -> (1, 128)
    w3_row = _pad2(w3q.T, (1, _D))     # (84, 1)    -> lane-dense row (1, 128)
    return w1_p, b1_p, w2_p, b2_p, w3_row


# ---------------------------------------------------------------------------
# Pallas kernel: fused quantized MLP forward
# ---------------------------------------------------------------------------

def _quant_relu6(x):
    """QuantReLU(bit_width=8, max_val=6): clamp to [0,6], fake-quant to 255 levels."""
    y = jnp.clip(x, 0.0, _RELU_MAX)
    return jnp.round(y * _RELU_INV_SCALE) * _RELU_SCALE


def _mlp_kernel(x_ref, w1_ref, b1_ref, w2_ref, b2_ref, w3_ref, o_ref):
    tile_b = x_ref.shape[0]
    # x arrives unpadded (tile_b, 30); zero-pad lanes to 128 in VMEM (cheap, exact).
    x = x_ref[...]
    x = jnp.concatenate(
        [x, jnp.zeros((tile_b, _D - _IN), jnp.float32)], axis=1)   # (tile_b, 128)

    h1 = jnp.dot(x, w1_ref[...], preferred_element_type=jnp.float32) + b1_ref[...]
    h1 = _quant_relu6(h1)
    h2 = jnp.dot(h1, w2_ref[...], preferred_element_type=jnp.float32) + b2_ref[...]
    h2 = _quant_relu6(h2)

    # fc3 computed transposed: (1,128) . (tile_b,128) contracting the feature dim
    # -> lane-dense (1, tile_b) row.  No XLU transpose, no 128x-amplified writeback.
    y = lax.dot_general(w3_ref[...], h2,
                        dimension_numbers=(((1,), (1,)), ((), ())),
                        preferred_element_type=jnp.float32)        # (1, tile_b)
    o_ref[...] = y.reshape(o_ref.shape)                            # (1, 1, tile_b)


@jax.jit
def quant_mlp_forward(x, w1_p, b1_p, w2_p, b2_p, w3_row):
    """x: (B, 30) f32; params pre-padded by pack_params() -> (B, 1) f32."""
    B = x.shape[0]
    b_align = _round_up(max(B, 1), 8)

    # Tile choice: >= 2 grid steps whenever the batch is non-trivial (so v7x's two
    # TensorCores both get work), capped at _TILE_CAP rows per step.
    num_tiles = max(2 if b_align >= 16 else 1, _cdiv(b_align, _TILE_CAP))
    tile_b = _round_up(_cdiv(b_align, num_tiles), 8)
    b_pad = tile_b * num_tiles

    x_p = jnp.pad(x, ((0, b_pad - B), (0, 0))) if b_pad != B else x

    out = pl.pallas_call(
        _mlp_kernel,
        out_shape=jax.ShapeDtypeStruct((num_tiles, 1, tile_b), jnp.float32),
        grid=(num_tiles,),
        in_specs=[
            pl.BlockSpec((tile_b, _IN), lambda i: (i, 0)),   # x: tiled over batch
            pl.BlockSpec((_D, _D), lambda i: (0, 0)),        # w1: resident
            pl.BlockSpec((1, _D), lambda i: (0, 0)),         # b1
            pl.BlockSpec((_D, _D), lambda i: (0, 0)),        # w2
            pl.BlockSpec((1, _D), lambda i: (0, 0)),         # b2
            pl.BlockSpec((1, _D), lambda i: (0, 0)),         # w3 (transposed row)
        ],
        out_specs=pl.BlockSpec((1, 1, tile_b), lambda i: (i, 0, 0)),
        compiler_params=pltpu.CompilerParams(
            dimension_semantics=("parallel",)),              # v7x: shard batch over 2 TCs
    )(x_p, w1_p, b1_p, w2_p, b2_p, w3_row)

    return out.reshape(b_pad, 1)[:B]


# ---------------------------------------------------------------------------
# Pure-JAX reference (for a coarse correctness check only)
# ---------------------------------------------------------------------------

def reference_forward(x, w1q, b1, w2q, b2, w3q):
    hi = lax.Precision.HIGHEST
    h1 = _quant_relu6(jnp.dot(x, w1q, precision=hi) + b1)
    h2 = _quant_relu6(jnp.dot(h1, w2q, precision=hi) + b2)
    return jnp.dot(h2, w3q, precision=hi)


# ---------------------------------------------------------------------------
# Driver
# ---------------------------------------------------------------------------

if __name__ == "__main__":
    key = jax.random.PRNGKey(0)
    k_x, k1, k2, k3 = jax.random.split(key, 4)

    # Deterministic parameter init + int8 weight fake-quant (QuantLinear weight path).
    w1, b1 = init_linear(k1, 30, 120, bias=True)
    w2, b2 = init_linear(k2, 120, 84, bias=True)
    w3, _ = init_linear(k3, 84, 1, bias=False)

    w1q = fake_quant_int8_weight(w1)
    w2q = fake_quant_int8_weight(w2)
    w3q = fake_quant_int8_weight(w3)

    # One-time layout prep, hoisted out of the per-call path.
    params = jax.block_until_ready(pack_params(w1q, b1, w2q, b2, w3q))

    # TODO(synk): brevitas QuantReLU activation scale is a learned parameter; here
    # we use its init-time value (6/255), matching the module at initialization.

    # Small single-tile case (matches the module's x = randn(1/2, 30)) and a
    # multi-tile case to exercise the batch grid / padding path.
    for B in (2, 300):
        x = jax.random.normal(k_x, (B, 30), dtype=jnp.float32)
        out = jax.block_until_ready(quant_mlp_forward(x, *params))
        ref = jax.block_until_ready(reference_forward(x, w1q, b1, w2q, b2, w3q))

        assert out.shape == (B, 1) and out.dtype == jnp.float32
        assert bool(jnp.all(jnp.isfinite(out)))
        # Loose tolerance: differences only from MXU f32 pass precision and
        # round-to-nearest ties in the fake-quantizers.
        assert bool(jnp.allclose(out, ref, atol=2e-1, rtol=2e-1))

    print("KERNEL_OK")
</pallas_src>

<mosaic_0001>
module attributes {stable_mosaic.version = 11 : i64} {
  func.func @_mlp_kernel(%arg0: i32, %arg1: memref<8x30xf32, #tpu.memory_space<vmem>>, %arg2: memref<128x128xf32, #tpu.memory_space<vmem>>, %arg3: memref<1x128xf32, #tpu.memory_space<vmem>>, %arg4: memref<128x128xf32, #tpu.memory_space<vmem>>, %arg5: memref<1x128xf32, #tpu.memory_space<vmem>>, %arg6: memref<1x128xf32, #tpu.memory_space<vmem>>, %arg7: memref<1x1x8xf32, #tpu.memory_space<vmem>>) attributes {dimension_semantics = [#tpu.dimension_semantics<parallel>], iteration_bounds = array<i64: 1>, scalar_prefetch = 0 : i64, scratch_operands = 0 : i64, tpu.core_type = #tpu.core_type<tc>, window_params = [{transform_indices = @transform_0, window_bounds = array<i64: 8, 30>}, {pipeline_mode = #tpu.pipeline_mode<synchronous>, transform_indices = @transform_1, window_bounds = array<i64: 128, 128>}, {pipeline_mode = #tpu.pipeline_mode<synchronous>, transform_indices = @transform_2, window_bounds = array<i64: 1, 128>}, {pipeline_mode = #tpu.pipeline_mode<synchronous>, transform_indices = @transform_3, window_bounds = array<i64: 128, 128>}, {pipeline_mode = #tpu.pipeline_mode<synchronous>, transform_indices = @transform_4, window_bounds = array<i64: 1, 128>}, {pipeline_mode = #tpu.pipeline_mode<synchronous>, transform_indices = @transform_5, window_bounds = array<i64: 1, 128>}, {transform_indices = @transform_6, window_bounds = array<i64: 1, 1, 8>}]} {
    %c0 = arith.constant 0 : index
    %c0_0 = arith.constant 0 : index
    %0 = vector.load %arg1[%c0, %c0_0] : memref<8x30xf32, #tpu.memory_space<vmem>>, vector<8x30xf32>
    %cst = arith.constant 0.000000e+00 : f32
    %1 = vector.broadcast %cst : f32 to vector<8x98xf32>
    %2 = tpu.concatenate %0, %1 in 1 : vector<8x30xf32>, vector<8x98xf32> -> vector<8x128xf32>
    %c0_1 = arith.constant 0 : index
    %c0_2 = arith.constant 0 : index
    %3 = vector.load %arg2[%c0_1, %c0_2] : memref<128x128xf32, #tpu.memory_space<vmem>>, vector<128x128xf32>
    %cst_3 = arith.constant dense<0.000000e+00> : vector<8x128xf32>
    %4 = tpu.matmul %2, %3, %cst_3 {dimension_numbers = #tpu.dot_dimension_numbers<[1], [0], [0], [1], [0, 0, 1, 1], [], []>} : vector<8x128xf32>, vector<128x128xf32>, vector<8x128xf32> -> vector<8x128xf32>
    %c0_4 = arith.constant 0 : index
    %c0_5 = arith.constant 0 : index
    %5 = vector.load %arg3[%c0_4, %c0_5] : memref<1x128xf32, #tpu.memory_space<vmem>>, vector<1x128xf32>
    %6 = vector.broadcast %5 : vector<1x128xf32> to vector<8x128xf32>
    %7 = arith.addf %4, %6 : vector<8x128xf32>
    %cst_6 = arith.constant 0.000000e+00 : f32
    %cst_7 = arith.constant 6.000000e+00 : f32
    %8 = vector.broadcast %cst_6 : f32 to vector<8x128xf32>
    %9 = arith.maximumf %8, %7 : vector<8x128xf32>
    %10 = vector.broadcast %cst_7 : f32 to vector<8x128xf32>
    %11 = arith.minimumf %10, %9 : vector<8x128xf32>
    %cst_8 = arith.constant 4.250000e+01 : f32
    %12 = vector.broadcast %cst_8 : f32 to vector<8x128xf32>
    %13 = arith.mulf %11, %12 : vector<8x128xf32>
    %14 = math.roundeven %13 : vector<8x128xf32>
    %cst_9 = arith.constant 0.0235294122 : f32
    %15 = vector.broadcast %cst_9 : f32 to vector<8x128xf32>
    %16 = arith.mulf %14, %15 : vector<8x128xf32>
    %c0_10 = arith.constant 0 : index
    %c0_11 = arith.constant 0 : index
    %17 = vector.load %arg4[%c0_10, %c0_11] : memref<128x128xf32, #tpu.memory_space<vmem>>, vector<128x128xf32>
    %cst_12 = arith.constant dense<0.000000e+00> : vector<8x128xf32>
    %18 = tpu.matmul %16, %17, %cst_12 {dimension_numbers = #tpu.dot_dimension_numbers<[1], [0], [0], [1], [0, 0, 1, 1], [], []>} : vector<8x128xf32>, vector<128x128xf32>, vector<8x128xf32> -> vector<8x128xf32>
    %c0_13 = arith.constant 0 : index
    %c0_14 = arith.constant 0 : index
    %19 = vector.load %arg5[%c0_13, %c0_14] : memref<1x128xf32, #tpu.memory_space<vmem>>, vector<1x128xf32>
    %20 = vector.broadcast %19 : vector<1x128xf32> to vector<8x128xf32>
    %21 = arith.addf %18, %20 : vector<8x128xf32>
    %cst_15 = arith.constant 0.000000e+00 : f32
    %cst_16 = arith.constant 6.000000e+00 : f32
    %22 = vector.broadcast %cst_15 : f32 to vector<8x128xf32>
    %23 = arith.maximumf %22, %21 : vector<8x128xf32>
    %24 = vector.broadcast %cst_16 : f32 to vector<8x128xf32>
    %25 = arith.minimumf %24, %23 : vector<8x128xf32>
    %cst_17 = arith.constant 4.250000e+01 : f32
    %26 = vector.broadcast %cst_17 : f32 to vector<8x128xf32>
    %27 = arith.mulf %25, %26 : vector<8x128xf32>
    %28 = math.roundeven %27 : vector<8x128xf32>
    %cst_18 = arith.constant 0.0235294122 : f32
    %29 = vector.broadcast %cst_18 : f32 to vector<8x128xf32>
    %30 = arith.mulf %28, %29 : vector<8x128xf32>
    %c0_19 = arith.constant 0 : index
    %c0_20 = arith.constant 0 : index
    %31 = vector.load %arg6[%c0_19, %c0_20] : memref<1x128xf32, #tpu.memory_space<vmem>>, vector<1x128xf32>
    %cst_21 = arith.constant dense<0.000000e+00> : vector<1x8xf32>
    %32 = tpu.matmul %31, %30, %cst_21 {dimension_numbers = #tpu.dot_dimension_numbers<[1], [1], [0], [0], [0, 0, 1, 0], [], []>} : vector<1x128xf32>, vector<8x128xf32>, vector<1x8xf32> -> vector<1x8xf32>
    %33 = vector.shape_cast %32 : vector<1x8xf32> to vector<1x1x8xf32>
    %c0_22 = arith.constant 0 : index
    %c0_23 = arith.constant 0 : index
    %c0_24 = arith.constant 0 : index
    %34 = vector.load %arg7[%c0_22, %c0_23, %c0_24] : memref<1x1x8xf32, #tpu.memory_space<vmem>>, vector<1x1x8xf32>
    tpu.vector_store %arg7[%c0_22, %c0_23, %c0_24], %33 {strides = array<i32>} : memref<1x1x8xf32, #tpu.memory_space<vmem>>, vector<1x1x8xf32>,
    return
  }
  func.func @transform_0(%arg0: i32) -> (i32, i32) {
    %c0_i32 = arith.constant 0 : i32
    %c0_i32_0 = arith.constant 0 : i32
    return %arg0, %c0_i32 : i32, i32
  }
  func.func @transform_1(%arg0: i32) -> (i32, i32) {
    %c0_i32 = arith.constant 0 : i32
    %c0_i32_0 = arith.constant 0 : i32
    %c0_i32_1 = arith.constant 0 : i32
    return %c0_i32, %c0_i32_0 : i32, i32
  }
  func.func @transform_2(%arg0: i32) -> (i32, i32) {
    %c0_i32 = arith.constant 0 : i32
    %c0_i32_0 = arith.constant 0 : i32
    %c0_i32_1 = arith.constant 0 : i32
    return %c0_i32, %c0_i32_0 : i32, i32
  }
  func.func @transform_3(%arg0: i32) -> (i32, i32) {
    %c0_i32 = arith.constant 0 : i32
    %c0_i32_0 = arith.constant 0 : i32
    %c0_i32_1 = arith.constant 0 : i32
    return %c0_i32, %c0_i32_0 : i32, i32
  }
  func.func @transform_4(%arg0: i32) -> (i32, i32) {
    %c0_i32 = arith.constant 0 : i32
    %c0_i32_0 = arith.constant 0 : i32
    %c0_i32_1 = arith.constant 0 : i32
    return %c0_i32, %c0_i32_0 : i32, i32
  }
  func.func @transform_5(%arg0: i32) -> (i32, i32) {
    %c0_i32 = arith.constant 0 : i32
    %c0_i32_0 = arith.constant 0 : i32
    %c0_i32_1 = arith.constant 0 : i32
    return %c0_i32, %c0_i32_0 : i32, i32
  }
  func.func @transform_6(%arg0: i32) -> (i32, i32, i32) {
    %c0_i32 = arith.constant 0 : i32
    %c0_i32_0 = arith.constant 0 : i32
    %c0_i32_1 = arith.constant 0 : i32
    return %arg0, %c0_i32, %c0_i32_0 : i32, i32, i32
  }
}

</mosaic_0001>

<bundles_post_ra>
// kernel: quant_mlp_forward.1
= control target key start
LH: loop header
LB: loop body
LE: loop exit
PB: predicated region body
PF: predicated region fallthrough
CT: control target
= control target key end

     0   :  { %11 = vsyncpa [#allocation3], 0  ;;  %s610_s0 = inlined_call_operand.vmem [shape: f32[8,30], index: 0, kind: input, shape index: {}]   ;;  %s611_s1 = inlined_call_operand.hbm [shape: f32[128,128], index: 1, kind: input, shape index: {}]   ;;  %s612_s2 = inlined_call_operand.vmem [shape: f32[1,128], index: 2, kind: input, shape index: {}]   ;;  %s613_s3 = inlined_call_operand.hbm [shape: f32[128,128], index: 3, kind: input, shape index: {}]   ;;  %s614_s4 = inlined_call_operand.vmem [shape: f32[1,128], index: 4, kind: input, shape index: {}]   ;;  %s615_s5 = inlined_call_operand.vmem [shape: f32[1,128], index: 5, kind: input, shape index: {}]   ;;  %s616_s6 = inlined_call_operand.vmem [shape: f32[1,1,8], index: 6, kind: output, shape index: {}]  }
   0x1   :  { %12 = vsyncpa [#allocation5], 0  ;;  %s509_s21 = smov [#allocation2]  }
   0x2   :  { %s20_s22 = sshll.u32 %s509_s21, 4  ;;  %s21_s22 = int_to_ptr.vmem [resolvable:$true] %s20_s22 }
   0x3   :  { %s473_s23 = scalar_lea.vmem %s21_s22, 2048  ;;  %p478_p1 = scmp.lt.s32.totalorder %s21_s22, %s21_s22 }
   0x4   :  { %p474_p0 = scmp.ne.s32.totalorder %s21_s22, %s473_s23  ;;  %p479_p2 = scmp.lt.s32.totalorder %s473_s23, %s473_s23 }
   0x6   :  { %p480_p3 = por %p479_p2, %p478_p1 }
   0x8   :  { %p481_p4 = pnand %p480_p3, %p474_p0 }
   0xa   :  { %484 = shalt.err (!%p481_p4)
}
   0xb   :  { %s510_s24 = smov 128   ;;  %s511_s25 = smov 8  }
   0xc   :  { %26 = dma.hbm_to_vmem [thread:$0]  %s611_s1, 2048, %s21_s22, [#allocation3], %s510_s24, %s510_s24, %s511_s25  }
   0xd   :  { %s512_s28 = smov [#allocation4]  }
   0xe   :  { %s34_s29 = sshll.u32 %s512_s28, 4  ;;  %s35_s29 = int_to_ptr.vmem [resolvable:$true] %s34_s29 }
   0xf   :  { %s493_s30 = scalar_lea.vmem %s35_s29, 2048  ;;  %p498_p6 = scmp.lt.s32.totalorder %s35_s29, %s35_s29 }
  0x10   :  { %p494_p5 = scmp.ne.s32.totalorder %s35_s29, %s493_s30  ;;  %p499_p7 = scmp.lt.s32.totalorder %s493_s30, %s493_s30 }
  0x12   :  { %p500_p8 = por %p499_p7, %p498_p6 }
  0x14   :  { %p501_p9 = pnand %p500_p8, %p494_p5 }
  0x16   :  { %504 = shalt.err (!%p501_p9)
}
  0x17   :  { %40 = dma.hbm_to_vmem [thread:$0]  %s613_s3, 2048, %s35_s29, [#allocation5], %s510_s24, %s510_s24, %s511_s25  }
  0x18   :  { %505 = dma.done.wait [#allocation3], 2048  }
  0x19   :  { %506 = vsyncadd [#allocation3], 4294965248 }
  0x1a   :  { %507 = dma.done.wait [#allocation5], 2048  }
  0x1b   :  { %508 = vsyncadd [#allocation5], 4294965248  ;;  %v513_v0 = vmov 0.0   ;;  %vm514_vm0 = vmmov 0   ;;  %v69_v1 = vld [vmem:[#allocation2 + $0x78] sm:$0xff]  ;;  %v68_v2 = vld [vmem:[#allocation2 + $0x70] sm:$0xff] }
  0x1c   :  { %368 = vmatprep.subr.mxu0 %v513_v0  ;;  %400 = vmatprep.mubr.msk.f32.mxu0 %vm514_vm0, %v513_v0  ;;  %v67_v3 = vld [vmem:[#allocation2 + $0x68] sm:$0xff]  ;;  %v66_v4 = vld [vmem:[#allocation2 + $0x60] sm:$0xff]  ;;  %v167_v5 = vld [vmem:[#allocation4 + $0x78] sm:$0xff]  ;;  %vm52_vm1 = vcmask 244736   ;;  %vm321_vm4 = vcmask 57344  }
  0x1d   :  { %403 = vmatprep.subr.mxu1 %v513_v0  ;;  %435 = vmatprep.mubr.msk.f32.mxu1 %vm514_vm0, %v513_v0  ;;  %v65_v6 = vld [vmem:[#allocation2 + $0x58] sm:$0xff]  ;;  %v166_v7 = vld [vmem:[#allocation4 + $0x70] sm:$0xff]  ;;  %v165_v8 = vld [vmem:[#allocation4 + $0x68] sm:$0xff] }
  0x1e   :  { %369 = vmatpush3.msra.mxu0 %v69_v1  ;;  %404 = vmatpush3.msra.mxu1 %v167_v5  ;;  %v64_v9 = vld [vmem:[#allocation2 + $0x50] sm:$0xff]  ;;  %v164_v10 = vld [vmem:[#allocation4 + $0x60] sm:$0xff]  ;;  %v63_v11 = vld [vmem:[#allocation2 + $0x48] sm:$0xff] }
  0x1f   :  { %370 = vmatprep.subr.mxu0 %v513_v0  ;;  %405 = vmatprep.subr.mxu1 %v513_v0  ;;  %v163_v12 = vld [vmem:[#allocation4 + $0x58] sm:$0xff]  ;;  %v62_v13 = vld [vmem:[#allocation2 + $0x40] sm:$0xff]  ;;  %v162_v14 = vld [vmem:[#allocation4 + $0x50] sm:$0xff] }
  0x20   :  { %371 = vmatpush3.msra.mxu0 %v68_v2  ;;  %406 = vmatpush3.msra.mxu1 %v166_v7  ;;  %v61_v15 = vld [vmem:[#allocation2 + $0x38] sm:$0xff]  ;;  %v60_v16 = vld [vmem:[#allocation2 + $0x30] sm:$0xff]  ;;  %v59_v17 = vld [vmem:[#allocation2 + $0x28] sm:$0xff] }
  0x21   :  { %372 = vmatprep.subr.mxu0 %v513_v0  ;;  %407 = vmatprep.subr.mxu1 %v513_v0  ;;  %v58_v18 = vld [vmem:[#allocation2 + $0x20] sm:$0xff]  ;;  %v57_v19 = vld [vmem:[#allocation2 + $0x18] sm:$0xff]  ;;  %v56_v20 = vld [vmem:[#allocation2 + $0x10] sm:$0xff] }
  0x22   :  { %373 = vmatpush3.msra.mxu0 %v67_v3  ;;  %408 = vmatpush3.msra.mxu1 %v165_v8  ;;  %v55_v21 = vld [vmem:[#allocation2 + $0x8] sm:$0xff]  ;;  %v54_v22 = vld [vmem:[#allocation2] sm:$0xff]  ;;  %v159_v26 = vld [vmem:[#allocation4 + $0x38] sm:$0xff] }
  0x23   :  { %374 = vmatprep.subr.mxu0 %v513_v0  ;;  %409 = vmatprep.subr.mxu1 %v513_v0  ;;  %v51_v23 = vld [vmem:[%s610_s0] sm:$0xff]  ;;  %v161_v24 = vld [vmem:[#allocation4 + $0x48] sm:$0xff]  ;;  %v158_v27 = vld [vmem:[#allocation4 + $0x30] sm:$0xff] }
  0x24   :  { %375 = vmatpush3.msra.mxu0 %v66_v4  ;;  %410 = vmatpush3.msra.mxu1 %v164_v10  ;;  %v160_v25 = vld [vmem:[#allocation4 + $0x40] sm:$0xff]  ;;  %v157_v28 = vld [vmem:[#allocation4 + $0x28] sm:$0xff]  ;;  %v155_v30 = vld [vmem:[#allocation4 + $0x18] sm:$0xff] }
  0x25   :  { %376 = vmatprep.subr.mxu0 %v513_v0  ;;  %411 = vmatprep.subr.mxu1 %v513_v0  ;;  %v156_v29 = vld [vmem:[#allocation4 + $0x20] sm:$0xff]  ;;  %v154_v31 = vld [vmem:[#allocation4 + $0x10] sm:$0xff]  ;;  %v153_v32 = vld [vmem:[#allocation4 + $0x8] sm:$0xff] }
  0x26   :  { %377 = vmatpush3.msra.mxu0 %v65_v6  ;;  %412 = vmatpush3.msra.mxu1 %v163_v12  ;;  %v152_v33 = vld [vmem:[#allocation4] sm:$0xff] }
  0x27   :  { %378 = vmatprep.subr.mxu0 %v513_v0  ;;  %413 = vmatprep.subr.mxu1 %v513_v0  ;;  %v329_v34 = vld [vmem:[%s612_s2] ss:$0 sm:$0xff] }
  0x28   :  { %379 = vmatpush3.msra.mxu0 %v64_v9  ;;  %414 = vmatpush3.msra.mxu1 %v162_v14  ;;  %v331_v49 = vld [vmem:[%s614_s4] ss:$0 sm:$0xff] }
  0x29   :  { %380 = vmatprep.subr.mxu0 %v513_v0  ;;  %415 = vmatprep.subr.mxu1 %v513_v0 }
  0x2a   :  { %381 = vmatpush3.msra.mxu0 %v63_v11  ;;  %416 = vmatpush3.msra.mxu1 %v161_v24 }
  0x2b   :  { %382 = vmatprep.subr.mxu0 %v513_v0  ;;  %417 = vmatprep.subr.mxu1 %v513_v0 }
  0x2c   :  { %383 = vmatpush3.msra.mxu0 %v62_v13  ;;  %418 = vmatpush3.msra.mxu1 %v160_v25 }
  0x2d   :  { %384 = vmatprep.subr.mxu0 %v513_v0  ;;  %419 = vmatprep.subr.mxu1 %v513_v0 }
  0x2e   :  { %385 = vmatpush3.msra.mxu0 %v61_v15  ;;  %420 = vmatpush3.msra.mxu1 %v159_v26 }
  0x2f   :  { %386 = vmatprep.subr.mxu0 %v513_v0  ;;  %421 = vmatprep.subr.mxu1 %v513_v0 }
  0x30   :  { %387 = vmatpush3.msra.mxu0 %v60_v16  ;;  %422 = vmatpush3.msra.mxu1 %v158_v27 }
  0x31   :  { %388 = vmatprep.subr.mxu0 %v513_v0  ;;  %423 = vmatprep.subr.mxu1 %v513_v0 }
  0x32   :  { %389 = vmatpush3.msra.mxu0 %v59_v17  ;;  %424 = vmatpush3.msra.mxu1 %v157_v28 }
  0x33   :  { %390 = vmatprep.subr.mxu0 %v513_v0  ;;  %425 = vmatprep.subr.mxu1 %v513_v0 }
  0x34   :  { %391 = vmatpush3.msra.mxu0 %v58_v18  ;;  %426 = vmatpush3.msra.mxu1 %v156_v29 }
  0x35   :  { %392 = vmatprep.subr.mxu0 %v513_v0  ;;  %427 = vmatprep.subr.mxu1 %v513_v0 }
  0x36   :  { %393 = vmatpush3.msra.mxu0 %v57_v19  ;;  %428 = vmatpush3.msra.mxu1 %v155_v30 }
  0x37   :  { %394 = vmatprep.subr.mxu0 %v513_v0  ;;  %429 = vmatprep.subr.mxu1 %v513_v0 }
  0x38   :  { %395 = vmatpush3.msra.mxu0 %v56_v20  ;;  %430 = vmatpush3.msra.mxu1 %v154_v31 }
  0x39   :  { %396 = vmatprep.subr.mxu0 %v513_v0  ;;  %431 = vmatprep.subr.mxu1 %v513_v0 }
  0x3a   :  { %397 = vmatpush3.msra.mxu0 %v55_v21  ;;  %432 = vmatpush3.msra.mxu1 %v153_v32 }
  0x3b   :  { %398 = vmatprep.subr.mxu0 %v513_v0  ;;  %433 = vmatprep.subr.mxu1 %v513_v0 }
  0x3c   :  { %399 = vmatpush3.msra.mxu0 %v54_v22  ;;  %434 = vmatpush3.msra.mxu1 %v152_v33 }
  0x3d   :  { %401 = vmatmul.mubr.msk.f32.vlgmr.msra.gmra.mxu0 %vm52_vm1, %v51_v23  ;;  %438 = vmatprep.subr.mxu0 %v513_v0 }
  0x3e   :  { %440 = vmatprep.mubr.msk.f32.mxu0 %vm514_vm0, %v513_v0  ;;  %v250_v0 = vld [vmem:[%s615_s5] sm:$0x1] }
  0xfd   :  { %v143_v35 = vpop.f32.mrf.mxu0 }
  0xfe   :  { %v144_v36 = vadd.f32 %v329_v34, %v143_v35 }
  0xff   :  { %v402_v37 = vpop.f32.mrf.mxu0 }
 0x100   :  { %v147_v38 = vmax.f32 %v144_v36, 0.0 }
 0x102   :  { %v148_v39 = vmin.f32 %v147_v38, 6.0 }
 0x104   :  { %v149_v40 = vmul.f32 42.5, %v148_v39 }
 0x106   :  { %v445_v41 = vcvt.f32.s32 %v149_v40  ;;  %v443_v43 = vand.u32 2147483647, %v149_v40  ;;  %v448_v44 = vand.u32 2147483648, %v149_v40 }
 0x108   :  { %v446_v42 = vcvt.s32.f32 %v445_v41  ;;  %vm444_vm2 = vcmp.lt.f32.partialorder %v443_v43, 8388608.0 }
 0x10a   :  { %v447_v45 = vand.u32 2147483647, %v446_v42 }
 0x10c   :  { %v449_v46 = vor.u32 %v448_v44, %v447_v45 }
 0x10e   :  { %v450_v47 = vsel %vm444_vm2, %v449_v46, %v149_v40 }
 0x10f   :  { %v151_v48 = vmul.f32 0.023529412, %v450_v47 }
 0x111   :  { %436 = vmatmul.mubr.f32.vlgmr.msra.gmra.mxu1 %v151_v48 }
 0x1d1   :  { %v241_v50 = vpop.f32.mrf.mxu1 }
 0x1d2   :  { %v242_v51 = vadd.f32 %v331_v49, %v241_v50 }
 0x1d3   :  { %v437_v52 = vpop.f32.mrf.mxu1 }
 0x1d4   :  { %v245_v53 = vmax.f32 %v242_v51, 0.0 }
 0x1d6   :  { %v246_v54 = vmin.f32 %v245_v53, 6.0 }
 0x1d8   :  { %v247_v55 = vmul.f32 42.5, %v246_v54 }
 0x1da   :  { %v453_v56 = vcvt.f32.s32 %v247_v55  ;;  %v451_v58 = vand.u32 2147483647, %v247_v55  ;;  %v456_v60 = vand.u32 2147483648, %v247_v55 }
 0x1dc   :  { %v454_v57 = vcvt.s32.f32 %v453_v56  ;;  %vm452_vm3 = vcmp.lt.f32.partialorder %v451_v58, 8388608.0 }
 0x1de   :  { %v455_v59 = vand.u32 2147483647, %v454_v57 }
 0x1e0   :  { %v457_v61 = vor.u32 %v456_v60, %v455_v59 }
 0x1e2   :  { %v458_v62 = vsel %vm452_vm3, %v457_v61, %v247_v55 }
 0x1e3   :  { %v249_v63 = vmul.f32 0.023529412, %v458_v62 }
 0x1e5   :  { %439 = vmatpush3.xpose.msra.mxu0 %v249_v63 }
 0x1e8   :  { %441 = vmatmul.mubr.f32.vlgmr.msra.gmra.mxu0 %v250_v0 }
 0x2a8   :  { %v317_v1 = vpop.f32.mrf.mxu0 }
 0x2a9   :  { %322 = vst.msk [vmem:[%s616_s6] sm:$0x1] %vm321_vm4, %v317_v1 }
 0x2aa   :  { %v442_v2 = vpop.f32.mrf.mxu0 }
 0x2ab   :  { %327 = vsyncpa [#allocation3], 1 }
 0x2ac   :  { %328 = vsyncpa [#allocation5], 1 }

</bundles_post_ra>
